<compile_context>
chip_gen: v7x
topology: tpu7x:2x2x1
jax: 0.10.0
libtpu: 0.0.40
codegen_flags: <defaults>
</compile_context>

<pallas_src>
import jax
import jax.numpy as jnp
from jax import lax
from jax.experimental import pallas as pl
from jax.experimental.pallas import tpu as pltpu
from functools import partial


def _round_up(n, m):
    return ((n + m - 1) // m) * m


def _pick_head_block(num_heads, head_dim, target=256):
    """Largest divisor of num_heads with head_block * head_dim <= target."""
    best = 1
    for cand in range(1, num_heads + 1):
        if num_heads % cand == 0 and cand * head_dim <= target:
            best = cand
    return best


def attention_kernel(x_ref, wqkv_ref, wp_ref, bias_ref, o_ref, acc_ref, *,
                     head_block, head_dim, seq_len):
    """One grid step = one (batch element, head group of `head_block` heads).

    x_ref    : (1, Np, C)            activations (resident across the g axis)
    wqkv_ref : (1, C, 3*HB*hd)       group's qkv weight block (q scale folded)
    wp_ref   : (1, HB*hd, C)         group's output-projection rows
    bias_ref : (1, C) f32            output-projection bias
    o_ref    : (1, Np, C)            output block (written once, at last group)
    acc_ref  : (Np, C) f32           VMEM accumulator over head groups
    """
    g = pl.program_id(1)
    num_g = pl.num_programs(1)

    @pl.when(g == 0)
    def _():
        acc_ref[...] = jnp.zeros_like(acc_ref)

    x = x_ref[0]                         # (Np, C) in MXU dtype (f32 or bf16)
    cdt = wqkv_ref.dtype                 # MXU operand dtype
    hbhd = head_block * head_dim
    n_pad = x.shape[0]

    # One dense qkv projection for the whole head group: lane-wide MXU output.
    qkv = jnp.dot(x, wqkv_ref[0], preferred_element_type=jnp.float32)

    # Key-padding mask (built only when the sequence was padded; hoisted out
    # of the per-head loop).
    key_valid = None
    if n_pad != seq_len:
        key_valid = lax.broadcasted_iota(jnp.int32, (1, n_pad), 1) < seq_len

    ctx_parts = []
    for hb in range(head_block):         # static unroll over the head block
        lo = hb * head_dim
        hi = lo + head_dim
        q = qkv[:, lo:hi]                                # (Np, hd), pre-scaled
        k = qkv[:, hbhd + lo:hbhd + hi]                  # (Np, hd)
        v = qkv[:, 2 * hbhd + lo:2 * hbhd + hi]          # (Np, hd)

        # Scores: contract on head_dim directly -- no materialized transpose.
        s = lax.dot_general(
            q.astype(cdt), k.astype(cdt),
            dimension_numbers=(((1,), (1,)), ((), ())),
            preferred_element_type=jnp.float32)          # (Np, Np)

        if key_valid is not None:
            s = jnp.where(key_valid, s, -1e30)           # mask padded keys

        # Numerically-stable softmax, strictly in f32 (v5e has no bf16 EUP).
        s = s - jnp.max(s, axis=-1, keepdims=True)
        p = jnp.exp(s)
        p = p * pl.reciprocal(jnp.sum(p, axis=-1, keepdims=True), approx=True)
        # attn_drop is identity (p=0.0)

        ctx_parts.append(jnp.dot(p.astype(cdt), v.astype(cdt),
                                 preferred_element_type=jnp.float32))

    ctx = ctx_parts[0] if head_block == 1 else jnp.concatenate(ctx_parts, -1)

    # One dense output-projection slab per group: contraction depth HB*hd.
    acc_ref[...] += jnp.dot(ctx.astype(cdt), wp_ref[0],
                            preferred_element_type=jnp.float32)

    @pl.when(g == num_g - 1)
    def _():
        # proj bias; proj_drop is identity (p=0.0)
        o_ref[0] = (acc_ref[...] + bias_ref[...]).astype(o_ref.dtype)


def attention_forward(x, w_qkv, w_proj, b_proj, *, num_heads,
                      mxu_dtype=jnp.float32, head_block=None,
                      vmem_limit_bytes=48 * 1024 * 1024):
    """x: (B, N, C); w_qkv: (C, 3C) (= W_qkv^T); w_proj: (C, C); b_proj: (C,).

    `mxu_dtype=jnp.bfloat16` stores activations/weights bf16 in HBM and feeds
    the MXU bf16 operands (f32 accumulation + f32 softmax) -- the fast path on
    v6e / v7x (and halves DMA/VMEM bytes on v5e too).
    """
    B, N, C = x.shape
    assert C % num_heads == 0
    hd = C // num_heads
    scale = hd ** (-0.5)
    out_dtype = x.dtype

    if head_block is None:
        head_block = _pick_head_block(num_heads, hd)
    assert num_heads % head_block == 0
    G = num_heads // head_block
    hbhd = head_block * hd

    # Lane/sublane-friendly sequence padding (e.g. ViT-B 197 -> 256).
    Np = _round_up(N, 8) if N <= 128 else _round_up(N, 128)

    # ---- host-side (XLA) weight re-layout: free relative to the kernel ----
    # torch column order of w_qkv is (3, H, hd); fold scale into q, group by
    # head blocks of HB heads -> (G, C, 3*HB*hd) with per-group column order
    # [q heads | k heads | v heads].
    w3 = w_qkv.reshape(C, 3, num_heads, hd)
    scale_vec = jnp.array([scale, 1.0, 1.0], dtype=w3.dtype).reshape(1, 3, 1, 1)
    w3 = w3 * scale_vec
    wqkv_b = jnp.transpose(w3.reshape(C, 3, G, head_block, hd),
                           (2, 0, 1, 3, 4)).reshape(G, C, 3 * hbhd)
    wqkv_b = wqkv_b.astype(mxu_dtype)
    wp_b = w_proj.reshape(G, hbhd, C).astype(mxu_dtype)        # rows by head
    bias = b_proj.reshape(1, C).astype(jnp.float32)

    x_p = x if Np == N else jnp.pad(x, ((0, 0), (0, Np - N), (0, 0)))
    x_in = x_p.astype(mxu_dtype)

    # Advisory cost estimate (lets XLA overlap surrounding ops).
    flops = 2 * B * (Np * C * 3 * C                  # qkv projection
                     + num_heads * 2 * Np * Np * hd  # scores + ctx
                     + Np * C * C)                   # output projection
    transcendentals = B * num_heads * Np * Np
    bytes_accessed = int(
        x_in.size * x_in.dtype.itemsize
        + B * (wqkv_b.size * wqkv_b.dtype.itemsize
               + wp_b.size * wp_b.dtype.itemsize)    # streamed per batch elem
        + bias.size * bias.dtype.itemsize
        + B * Np * C * jnp.dtype(out_dtype).itemsize)

    kernel = partial(attention_kernel, head_block=head_block, head_dim=hd,
                     seq_len=N)

    out = pl.pallas_call(
        kernel,
        out_shape=jax.ShapeDtypeStruct((B, Np, C), out_dtype),
        grid_spec=pltpu.PrefetchScalarGridSpec(
            num_scalar_prefetch=0,
            grid=(B, G),
            in_specs=[
                # activations: one batch element, resident across head groups
                pl.BlockSpec((1, Np, C), lambda b, g: (b, 0, 0)),
                # per-group weight blocks: streamed / double-buffered over g
                pl.BlockSpec((1, C, 3 * hbhd), lambda b, g: (g, 0, 0)),
                pl.BlockSpec((1, hbhd, C), lambda b, g: (g, 0, 0)),
                # bias: tiny, constant index
                pl.BlockSpec((1, C), lambda b, g: (0, 0)),
            ],
            out_specs=pl.BlockSpec((1, Np, C), lambda b, g: (b, 0, 0)),
            scratch_shapes=[pltpu.VMEM((Np, C), jnp.float32)],
        ),
        compiler_params=pltpu.CompilerParams(
            dimension_semantics=("parallel", "arbitrary"),
            vmem_limit_bytes=vmem_limit_bytes),
        cost_estimate=pl.CostEstimate(flops=int(flops),
                                      transcendentals=int(transcendentals),
                                      bytes_accessed=bytes_accessed),
    )(x_in, wqkv_b, wp_b, bias)

    return out if Np == N else out[:, :N, :]


def attention_reference(x, w_qkv, w_proj, b_proj, *, num_heads):
    """Pure-JAX reference mirroring the PyTorch forward."""
    B, N, C = x.shape
    head_dim = C // num_heads
    scale = head_dim ** (-0.5)
    qkv = x @ w_qkv                                           # (B, N, 3C)
    qkv = qkv.reshape(B, N, 3, num_heads, head_dim)
    qkv = jnp.transpose(qkv, (2, 0, 3, 1, 4))                 # (3, B, H, N, hd)
    q, k, v = qkv[0], qkv[1], qkv[2]
    q = q * scale
    attn = jnp.einsum('bhqd,bhkd->bhqk', q, k)
    attn = jax.nn.softmax(attn, axis=-1)
    out = jnp.einsum('bhqk,bhkd->bhqd', attn, v)
    out = jnp.transpose(out, (0, 2, 1, 3)).reshape(B, N, C)
    return out @ w_proj + b_proj


if __name__ == "__main__":
    # Small shapes consistent with the module: B=2 sequences of N=8 tokens,
    # embed dim C=32, num_heads=8 (head_dim=4).
    B, N, C = 2, 8, 32
    num_heads = 8

    key = jax.random.PRNGKey(0)
    kx, kqkv, kproj, kbias = jax.random.split(key, 4)

    x = jax.random.normal(kx, (B, N, C), dtype=jnp.float32)

    # Deterministic synthetic parameters (nn.Linear shapes, pre-transposed).
    # qkv: Linear(C, 3C, bias=False) -> weight (3C, C); we store W^T = (C, 3C).
    w_qkv = 0.02 * jax.random.normal(kqkv, (C, 3 * C), dtype=jnp.float32)
    # proj: Linear(C, C) -> weight (C, C) + bias (C,); we store W^T = (C, C).
    w_proj = 0.02 * jax.random.normal(kproj, (C, C), dtype=jnp.float32)
    b_proj = 0.02 * jax.random.normal(kbias, (C,), dtype=jnp.float32)

    ref = attention_reference(x, w_qkv, w_proj, b_proj, num_heads=num_heads)

    # f32 MXU operands, single head group (head_block auto = 8).
    out = attention_forward(x, w_qkv, w_proj, b_proj, num_heads=num_heads)
    out = jax.block_until_ready(out)
    assert out.shape == (B, N, C)
    assert jnp.allclose(out, ref, atol=2e-3, rtol=2e-3), \
        "f32 kernel mismatch vs reference"

    # Multi-group path (exercises the head-group accumulator, G=4).
    out_g = attention_forward(x, w_qkv, w_proj, b_proj, num_heads=num_heads,
                              head_block=2)
    out_g = jax.block_until_ready(out_g)
    assert jnp.allclose(out_g, ref, atol=2e-3, rtol=2e-3), \
        "head-blocked kernel mismatch vs reference"

    # Padded-sequence / key-mask path (N=5 -> padded to 8 in-kernel).
    x5 = x[:, :5, :]
    ref5 = attention_reference(x5, w_qkv, w_proj, b_proj, num_heads=num_heads)
    out5 = attention_forward(x5, w_qkv, w_proj, b_proj, num_heads=num_heads)
    out5 = jax.block_until_ready(out5)
    assert out5.shape == (B, 5, C)
    assert jnp.allclose(out5, ref5, atol=2e-3, rtol=2e-3), \
        "padded-sequence kernel mismatch vs reference"

    # bf16 MXU operands (v6e/v7x fast path), f32 accumulation / softmax.
    out_bf16 = attention_forward(x, w_qkv, w_proj, b_proj,
                                 num_heads=num_heads,
                                 mxu_dtype=jnp.bfloat16)
    out_bf16 = jax.block_until_ready(out_bf16)
    assert jnp.allclose(out_bf16, ref, atol=1e-2, rtol=5e-2), \
        "bf16 kernel mismatch vs reference"

    print("KERNEL_OK")
</pallas_src>

<mosaic_0001>
module attributes {stable_mosaic.version = 11 : i64} {
  func.func @attention_kernel(%arg0: i32, %arg1: i32, %arg2: memref<1x8x32xf32, #tpu.memory_space<vmem>>, %arg3: memref<1x32x96xf32, #tpu.memory_space<vmem>>, %arg4: memref<1x32x32xf32, #tpu.memory_space<vmem>>, %arg5: memref<1x32xf32, #tpu.memory_space<vmem>>, %arg6: memref<1x8x32xf32, #tpu.memory_space<vmem>>, %arg7: memref<8x32xf32, #tpu.memory_space<vmem>>) attributes {dimension_semantics = [#tpu.dimension_semantics<parallel>, #tpu.dimension_semantics<arbitrary>], iteration_bounds = array<i64: 2, 1>, scalar_prefetch = 0 : i64, scratch_operands = 1 : i64, tpu.core_type = #tpu.core_type<tc>, window_params = [{transform_indices = @transform_0, window_bounds = array<i64: 1, 8, 32>}, {transform_indices = @transform_1, window_bounds = array<i64: 1, 32, 96>}, {transform_indices = @transform_2, window_bounds = array<i64: 1, 32, 32>}, {pipeline_mode = #tpu.pipeline_mode<synchronous>, transform_indices = @transform_3, window_bounds = array<i64: 1, 32>}, {transform_indices = @transform_4, window_bounds = array<i64: 1, 8, 32>}]} {
    %c0_i32 = arith.constant 0 : i32
    %0 = arith.cmpi eq, %arg1, %c0_i32 : i32
    %1 = arith.extui %0 : i1 to i32
    %c0_i32_0 = arith.constant 0 : i32
    %2 = arith.cmpi ne, %1, %c0_i32_0 : i32
    scf.if %2 {
      %cst_48 = arith.constant 0.000000e+00 : f32
      %138 = vector.broadcast %cst_48 : f32 to vector<8x32xf32>
      %c0_49 = arith.constant 0 : index
      %c0_50 = arith.constant 0 : index
      %139 = vector.load %arg7[%c0_49, %c0_50] : memref<8x32xf32, #tpu.memory_space<vmem>>, vector<8x32xf32>
      tpu.vector_store %arg7[%c0_49, %c0_50], %138 {strides = array<i32>} : memref<8x32xf32, #tpu.memory_space<vmem>>, vector<8x32xf32>,
    } else {
    }
    %c0 = arith.constant 0 : index
    %c0_1 = arith.constant 0 : index
    %c0_2 = arith.constant 0 : index
    %3 = vector.load %arg2[%c0, %c0_1, %c0_2] : memref<1x8x32xf32, #tpu.memory_space<vmem>>, vector<1x8x32xf32>
    %4 = vector.shape_cast %3 : vector<1x8x32xf32> to vector<8x32xf32>
    %c0_3 = arith.constant 0 : index
    %c0_4 = arith.constant 0 : index
    %c0_5 = arith.constant 0 : index
    %5 = vector.load %arg3[%c0_3, %c0_4, %c0_5] : memref<1x32x96xf32, #tpu.memory_space<vmem>>, vector<1x32x96xf32>
    %6 = vector.shape_cast %5 : vector<1x32x96xf32> to vector<32x96xf32>
    %cst = arith.constant dense<0.000000e+00> : vector<8x96xf32>
    %7 = tpu.matmul %4, %6, %cst {dimension_numbers = #tpu.dot_dimension_numbers<[1], [0], [0], [1], [0, 0, 1, 1], [], []>} : vector<8x32xf32>, vector<32x96xf32>, vector<8x96xf32> -> vector<8x96xf32>
    %8 = vector.extract_strided_slice %7 {offsets = [0, 0], sizes = [8, 4], strides = [1, 1]} : vector<8x96xf32> to vector<8x4xf32>
    %9 = vector.extract_strided_slice %7 {offsets = [0, 32], sizes = [8, 4], strides = [1, 1]} : vector<8x96xf32> to vector<8x4xf32>
    %10 = vector.extract_strided_slice %7 {offsets = [0, 64], sizes = [8, 4], strides = [1, 1]} : vector<8x96xf32> to vector<8x4xf32>
    %cst_6 = arith.constant dense<0.000000e+00> : vector<8x8xf32>
    %11 = tpu.matmul %8, %9, %cst_6 {dimension_numbers = #tpu.dot_dimension_numbers<[1], [1], [0], [0], [0, 0, 1, 0], [], []>} : vector<8x4xf32>, vector<8x4xf32>, vector<8x8xf32> -> vector<8x8xf32>
    %cst_7 = arith.constant dense<0xFF800000> : vector<8xf32>
    %12 = vector.multi_reduction <maximumf>, %11, %cst_7 [1] : vector<8x8xf32> to vector<8xf32>
    %13 = vector.shape_cast %12 : vector<8xf32> to vector<8x1xf32>
    %14 = vector.broadcast %13 : vector<8x1xf32> to vector<8x8xf32>
    %15 = arith.subf %11, %14 : vector<8x8xf32>
    %16 = math.exp %15 : vector<8x8xf32>
    %cst_8 = arith.constant dense<0.000000e+00> : vector<8xf32>
    %17 = vector.multi_reduction <add>, %16, %cst_8 [1] : vector<8x8xf32> to vector<8xf32>
    %18 = vector.shape_cast %17 : vector<8xf32> to vector<8x1xf32>
    %19 = tpu.reciprocal %18 {approx = true} : vector<8x1xf32> -> vector<8x1xf32>
    %20 = vector.broadcast %19 : vector<8x1xf32> to vector<8x8xf32>
    %21 = arith.mulf %16, %20 : vector<8x8xf32>
    %cst_9 = arith.constant dense<0.000000e+00> : vector<8x4xf32>
    %22 = tpu.matmul %21, %10, %cst_9 {dimension_numbers = #tpu.dot_dimension_numbers<[1], [0], [0], [1], [0, 0, 1, 1], [], []>} : vector<8x8xf32>, vector<8x4xf32>, vector<8x4xf32> -> vector<8x4xf32>
    %23 = vector.extract_strided_slice %7 {offsets = [0, 4], sizes = [8, 4], strides = [1, 1]} : vector<8x96xf32> to vector<8x4xf32>
    %24 = vector.extract_strided_slice %7 {offsets = [0, 36], sizes = [8, 4], strides = [1, 1]} : vector<8x96xf32> to vector<8x4xf32>
    %25 = vector.extract_strided_slice %7 {offsets = [0, 68], sizes = [8, 4], strides = [1, 1]} : vector<8x96xf32> to vector<8x4xf32>
    %cst_10 = arith.constant dense<0.000000e+00> : vector<8x8xf32>
    %26 = tpu.matmul %23, %24, %cst_10 {dimension_numbers = #tpu.dot_dimension_numbers<[1], [1], [0], [0], [0, 0, 1, 0], [], []>} : vector<8x4xf32>, vector<8x4xf32>, vector<8x8xf32> -> vector<8x8xf32>
    %cst_11 = arith.constant dense<0xFF800000> : vector<8xf32>
    %27 = vector.multi_reduction <maximumf>, %26, %cst_11 [1] : vector<8x8xf32> to vector<8xf32>
    %28 = vector.shape_cast %27 : vector<8xf32> to vector<8x1xf32>
    %29 = vector.broadcast %28 : vector<8x1xf32> to vector<8x8xf32>
    %30 = arith.subf %26, %29 : vector<8x8xf32>
    %31 = math.exp %30 : vector<8x8xf32>
    %cst_12 = arith.constant dense<0.000000e+00> : vector<8xf32>
    %32 = vector.multi_reduction <add>, %31, %cst_12 [1] : vector<8x8xf32> to vector<8xf32>
    %33 = vector.shape_cast %32 : vector<8xf32> to vector<8x1xf32>
    %34 = tpu.reciprocal %33 {approx = true} : vector<8x1xf32> -> vector<8x1xf32>
    %35 = vector.broadcast %34 : vector<8x1xf32> to vector<8x8xf32>
    %36 = arith.mulf %31, %35 : vector<8x8xf32>
    %cst_13 = arith.constant dense<0.000000e+00> : vector<8x4xf32>
    %37 = tpu.matmul %36, %25, %cst_13 {dimension_numbers = #tpu.dot_dimension_numbers<[1], [0], [0], [1], [0, 0, 1, 1], [], []>} : vector<8x8xf32>, vector<8x4xf32>, vector<8x4xf32> -> vector<8x4xf32>
    %38 = vector.extract_strided_slice %7 {offsets = [0, 8], sizes = [8, 4], strides = [1, 1]} : vector<8x96xf32> to vector<8x4xf32>
    %39 = vector.extract_strided_slice %7 {offsets = [0, 40], sizes = [8, 4], strides = [1, 1]} : vector<8x96xf32> to vector<8x4xf32>
    %40 = vector.extract_strided_slice %7 {offsets = [0, 72], sizes = [8, 4], strides = [1, 1]} : vector<8x96xf32> to vector<8x4xf32>
    %cst_14 = arith.constant dense<0.000000e+00> : vector<8x8xf32>
    %41 = tpu.matmul %38, %39, %cst_14 {dimension_numbers = #tpu.dot_dimension_numbers<[1], [1], [0], [0], [0, 0, 1, 0], [], []>} : vector<8x4xf32>, vector<8x4xf32>, vector<8x8xf32> -> vector<8x8xf32>
    %cst_15 = arith.constant dense<0xFF800000> : vector<8xf32>
    %42 = vector.multi_reduction <maximumf>, %41, %cst_15 [1] : vector<8x8xf32> to vector<8xf32>
    %43 = vector.shape_cast %42 : vector<8xf32> to vector<8x1xf32>
    %44 = vector.broadcast %43 : vector<8x1xf32> to vector<8x8xf32>
    %45 = arith.subf %41, %44 : vector<8x8xf32>
    %46 = math.exp %45 : vector<8x8xf32>
    %cst_16 = arith.constant dense<0.000000e+00> : vector<8xf32>
    %47 = vector.multi_reduction <add>, %46, %cst_16 [1] : vector<8x8xf32> to vector<8xf32>
    %48 = vector.shape_cast %47 : vector<8xf32> to vector<8x1xf32>
    %49 = tpu.reciprocal %48 {approx = true} : vector<8x1xf32> -> vector<8x1xf32>
    %50 = vector.broadcast %49 : vector<8x1xf32> to vector<8x8xf32>
    %51 = arith.mulf %46, %50 : vector<8x8xf32>
    %cst_17 = arith.constant dense<0.000000e+00> : vector<8x4xf32>
    %52 = tpu.matmul %51, %40, %cst_17 {dimension_numbers = #tpu.dot_dimension_numbers<[1], [0], [0], [1], [0, 0, 1, 1], [], []>} : vector<8x8xf32>, vector<8x4xf32>, vector<8x4xf32> -> vector<8x4xf32>
    %53 = vector.extract_strided_slice %7 {offsets = [0, 12], sizes = [8, 4], strides = [1, 1]} : vector<8x96xf32> to vector<8x4xf32>
    %54 = vector.extract_strided_slice %7 {offsets = [0, 44], sizes = [8, 4], strides = [1, 1]} : vector<8x96xf32> to vector<8x4xf32>
    %55 = vector.extract_strided_slice %7 {offsets = [0, 76], sizes = [8, 4], strides = [1, 1]} : vector<8x96xf32> to vector<8x4xf32>
    %cst_18 = arith.constant dense<0.000000e+00> : vector<8x8xf32>
    %56 = tpu.matmul %53, %54, %cst_18 {dimension_numbers = #tpu.dot_dimension_numbers<[1], [1], [0], [0], [0, 0, 1, 0], [], []>} : vector<8x4xf32>, vector<8x4xf32>, vector<8x8xf32> -> vector<8x8xf32>
    %cst_19 = arith.constant dense<0xFF800000> : vector<8xf32>
    %57 = vector.multi_reduction <maximumf>, %56, %cst_19 [1] : vector<8x8xf32> to vector<8xf32>
    %58 = vector.shape_cast %57 : vector<8xf32> to vector<8x1xf32>
    %59 = vector.broadcast %58 : vector<8x1xf32> to vector<8x8xf32>
    %60 = arith.subf %56, %59 : vector<8x8xf32>
    %61 = math.exp %60 : vector<8x8xf32>
    %cst_20 = arith.constant dense<0.000000e+00> : vector<8xf32>
    %62 = vector.multi_reduction <add>, %61, %cst_20 [1] : vector<8x8xf32> to vector<8xf32>
    %63 = vector.shape_cast %62 : vector<8xf32> to vector<8x1xf32>
    %64 = tpu.reciprocal %63 {approx = true} : vector<8x1xf32> -> vector<8x1xf32>
    %65 = vector.broadcast %64 : vector<8x1xf32> to vector<8x8xf32>
    %66 = arith.mulf %61, %65 : vector<8x8xf32>
    %cst_21 = arith.constant dense<0.000000e+00> : vector<8x4xf32>
    %67 = tpu.matmul %66, %55, %cst_21 {dimension_numbers = #tpu.dot_dimension_numbers<[1], [0], [0], [1], [0, 0, 1, 1], [], []>} : vector<8x8xf32>, vector<8x4xf32>, vector<8x4xf32> -> vector<8x4xf32>
    %68 = vector.extract_strided_slice %7 {offsets = [0, 16], sizes = [8, 4], strides = [1, 1]} : vector<8x96xf32> to vector<8x4xf32>
    %69 = vector.extract_strided_slice %7 {offsets = [0, 48], sizes = [8, 4], strides = [1, 1]} : vector<8x96xf32> to vector<8x4xf32>
    %70 = vector.extract_strided_slice %7 {offsets = [0, 80], sizes = [8, 4], strides = [1, 1]} : vector<8x96xf32> to vector<8x4xf32>
    %cst_22 = arith.constant dense<0.000000e+00> : vector<8x8xf32>
    %71 = tpu.matmul %68, %69, %cst_22 {dimension_numbers = #tpu.dot_dimension_numbers<[1], [1], [0], [0], [0, 0, 1, 0], [], []>} : vector<8x4xf32>, vector<8x4xf32>, vector<8x8xf32> -> vector<8x8xf32>
    %cst_23 = arith.constant dense<0xFF800000> : vector<8xf32>
    %72 = vector.multi_reduction <maximumf>, %71, %cst_23 [1] : vector<8x8xf32> to vector<8xf32>
    %73 = vector.shape_cast %72 : vector<8xf32> to vector<8x1xf32>
    %74 = vector.broadcast %73 : vector<8x1xf32> to vector<8x8xf32>
    %75 = arith.subf %71, %74 : vector<8x8xf32>
    %76 = math.exp %75 : vector<8x8xf32>
    %cst_24 = arith.constant dense<0.000000e+00> : vector<8xf32>
    %77 = vector.multi_reduction <add>, %76, %cst_24 [1] : vector<8x8xf32> to vector<8xf32>
    %78 = vector.shape_cast %77 : vector<8xf32> to vector<8x1xf32>
    %79 = tpu.reciprocal %78 {approx = true} : vector<8x1xf32> -> vector<8x1xf32>
    %80 = vector.broadcast %79 : vector<8x1xf32> to vector<8x8xf32>
    %81 = arith.mulf %76, %80 : vector<8x8xf32>
    %cst_25 = arith.constant dense<0.000000e+00> : vector<8x4xf32>
    %82 = tpu.matmul %81, %70, %cst_25 {dimension_numbers = #tpu.dot_dimension_numbers<[1], [0], [0], [1], [0, 0, 1, 1], [], []>} : vector<8x8xf32>, vector<8x4xf32>, vector<8x4xf32> -> vector<8x4xf32>
    %83 = vector.extract_strided_slice %7 {offsets = [0, 20], sizes = [8, 4], strides = [1, 1]} : vector<8x96xf32> to vector<8x4xf32>
    %84 = vector.extract_strided_slice %7 {offsets = [0, 52], sizes = [8, 4], strides = [1, 1]} : vector<8x96xf32> to vector<8x4xf32>
    %85 = vector.extract_strided_slice %7 {offsets = [0, 84], sizes = [8, 4], strides = [1, 1]} : vector<8x96xf32> to vector<8x4xf32>
    %cst_26 = arith.constant dense<0.000000e+00> : vector<8x8xf32>
    %86 = tpu.matmul %83, %84, %cst_26 {dimension_numbers = #tpu.dot_dimension_numbers<[1], [1], [0], [0], [0, 0, 1, 0], [], []>} : vector<8x4xf32>, vector<8x4xf32>, vector<8x8xf32> -> vector<8x8xf32>
    %cst_27 = arith.constant dense<0xFF800000> : vector<8xf32>
    %87 = vector.multi_reduction <maximumf>, %86, %cst_27 [1] : vector<8x8xf32> to vector<8xf32>
    %88 = vector.shape_cast %87 : vector<8xf32> to vector<8x1xf32>
    %89 = vector.broadcast %88 : vector<8x1xf32> to vector<8x8xf32>
    %90 = arith.subf %86, %89 : vector<8x8xf32>
    %91 = math.exp %90 : vector<8x8xf32>
    %cst_28 = arith.constant dense<0.000000e+00> : vector<8xf32>
    %92 = vector.multi_reduction <add>, %91, %cst_28 [1] : vector<8x8xf32> to vector<8xf32>
    %93 = vector.shape_cast %92 : vector<8xf32> to vector<8x1xf32>
    %94 = tpu.reciprocal %93 {approx = true} : vector<8x1xf32> -> vector<8x1xf32>
    %95 = vector.broadcast %94 : vector<8x1xf32> to vector<8x8xf32>
    %96 = arith.mulf %91, %95 : vector<8x8xf32>
    %cst_29 = arith.constant dense<0.000000e+00> : vector<8x4xf32>
    %97 = tpu.matmul %96, %85, %cst_29 {dimension_numbers = #tpu.dot_dimension_numbers<[1], [0], [0], [1], [0, 0, 1, 1], [], []>} : vector<8x8xf32>, vector<8x4xf32>, vector<8x4xf32> -> vector<8x4xf32>
    %98 = vector.extract_strided_slice %7 {offsets = [0, 24], sizes = [8, 4], strides = [1, 1]} : vector<8x96xf32> to vector<8x4xf32>
    %99 = vector.extract_strided_slice %7 {offsets = [0, 56], sizes = [8, 4], strides = [1, 1]} : vector<8x96xf32> to vector<8x4xf32>
    %100 = vector.extract_strided_slice %7 {offsets = [0, 88], sizes = [8, 4], strides = [1, 1]} : vector<8x96xf32> to vector<8x4xf32>
    %cst_30 = arith.constant dense<0.000000e+00> : vector<8x8xf32>
    %101 = tpu.matmul %98, %99, %cst_30 {dimension_numbers = #tpu.dot_dimension_numbers<[1], [1], [0], [0], [0, 0, 1, 0], [], []>} : vector<8x4xf32>, vector<8x4xf32>, vector<8x8xf32> -> vector<8x8xf32>
    %cst_31 = arith.constant dense<0xFF800000> : vector<8xf32>
    %102 = vector.multi_reduction <maximumf>, %101, %cst_31 [1] : vector<8x8xf32> to vector<8xf32>
    %103 = vector.shape_cast %102 : vector<8xf32> to vector<8x1xf32>
    %104 = vector.broadcast %103 : vector<8x1xf32> to vector<8x8xf32>
    %105 = arith.subf %101, %104 : vector<8x8xf32>
    %106 = math.exp %105 : vector<8x8xf32>
    %cst_32 = arith.constant dense<0.000000e+00> : vector<8xf32>
    %107 = vector.multi_reduction <add>, %106, %cst_32 [1] : vector<8x8xf32> to vector<8xf32>
    %108 = vector.shape_cast %107 : vector<8xf32> to vector<8x1xf32>
    %109 = tpu.reciprocal %108 {approx = true} : vector<8x1xf32> -> vector<8x1xf32>
    %110 = vector.broadcast %109 : vector<8x1xf32> to vector<8x8xf32>
    %111 = arith.mulf %106, %110 : vector<8x8xf32>
    %cst_33 = arith.constant dense<0.000000e+00> : vector<8x4xf32>
    %112 = tpu.matmul %111, %100, %cst_33 {dimension_numbers = #tpu.dot_dimension_numbers<[1], [0], [0], [1], [0, 0, 1, 1], [], []>} : vector<8x8xf32>, vector<8x4xf32>, vector<8x4xf32> -> vector<8x4xf32>
    %113 = vector.extract_strided_slice %7 {offsets = [0, 28], sizes = [8, 4], strides = [1, 1]} : vector<8x96xf32> to vector<8x4xf32>
    %114 = vector.extract_strided_slice %7 {offsets = [0, 60], sizes = [8, 4], strides = [1, 1]} : vector<8x96xf32> to vector<8x4xf32>
    %115 = vector.extract_strided_slice %7 {offsets = [0, 92], sizes = [8, 4], strides = [1, 1]} : vector<8x96xf32> to vector<8x4xf32>
    %cst_34 = arith.constant dense<0.000000e+00> : vector<8x8xf32>
    %116 = tpu.matmul %113, %114, %cst_34 {dimension_numbers = #tpu.dot_dimension_numbers<[1], [1], [0], [0], [0, 0, 1, 0], [], []>} : vector<8x4xf32>, vector<8x4xf32>, vector<8x8xf32> -> vector<8x8xf32>
    %cst_35 = arith.constant dense<0xFF800000> : vector<8xf32>
    %117 = vector.multi_reduction <maximumf>, %116, %cst_35 [1] : vector<8x8xf32> to vector<8xf32>
    %118 = vector.shape_cast %117 : vector<8xf32> to vector<8x1xf32>
    %119 = vector.broadcast %118 : vector<8x1xf32> to vector<8x8xf32>
    %120 = arith.subf %116, %119 : vector<8x8xf32>
    %121 = math.exp %120 : vector<8x8xf32>
    %cst_36 = arith.constant dense<0.000000e+00> : vector<8xf32>
    %122 = vector.multi_reduction <add>, %121, %cst_36 [1] : vector<8x8xf32> to vector<8xf32>
    %123 = vector.shape_cast %122 : vector<8xf32> to vector<8x1xf32>
    %124 = tpu.reciprocal %123 {approx = true} : vector<8x1xf32> -> vector<8x1xf32>
    %125 = vector.broadcast %124 : vector<8x1xf32> to vector<8x8xf32>
    %126 = arith.mulf %121, %125 : vector<8x8xf32>
    %cst_37 = arith.constant dense<0.000000e+00> : vector<8x4xf32>
    %127 = tpu.matmul %126, %115, %cst_37 {dimension_numbers = #tpu.dot_dimension_numbers<[1], [0], [0], [1], [0, 0, 1, 1], [], []>} : vector<8x8xf32>, vector<8x4xf32>, vector<8x4xf32> -> vector<8x4xf32>
    %128 = tpu.concatenate %22, %37, %52, %67, %82, %97, %112, %127 in 1 : vector<8x4xf32>, vector<8x4xf32>, vector<8x4xf32>, vector<8x4xf32>, vector<8x4xf32>, vector<8x4xf32>, vector<8x4xf32>, vector<8x4xf32> -> vector<8x32xf32>
    %c0_38 = arith.constant 0 : index
    %c0_39 = arith.constant 0 : index
    %129 = vector.load %arg7[%c0_38, %c0_39] : memref<8x32xf32, #tpu.memory_space<vmem>>, vector<8x32xf32>
    %c0_40 = arith.constant 0 : index
    %c0_41 = arith.constant 0 : index
    %c0_42 = arith.constant 0 : index
    %130 = vector.load %arg4[%c0_40, %c0_41, %c0_42] : memref<1x32x32xf32, #tpu.memory_space<vmem>>, vector<1x32x32xf32>
    %131 = vector.shape_cast %130 : vector<1x32x32xf32> to vector<32x32xf32>
    %cst_43 = arith.constant dense<0.000000e+00> : vector<8x32xf32>
    %132 = tpu.matmul %128, %131, %cst_43 {dimension_numbers = #tpu.dot_dimension_numbers<[1], [0], [0], [1], [0, 0, 1, 1], [], []>} : vector<8x32xf32>, vector<32x32xf32>, vector<8x32xf32> -> vector<8x32xf32>
    %133 = arith.addf %129, %132 : vector<8x32xf32>
    %c0_44 = arith.constant 0 : index
    %c0_45 = arith.constant 0 : index
    %134 = vector.load %arg7[%c0_44, %c0_45] : memref<8x32xf32, #tpu.memory_space<vmem>>, vector<8x32xf32>
    tpu.vector_store %arg7[%c0_44, %c0_45], %133 {strides = array<i32>} : memref<8x32xf32, #tpu.memory_space<vmem>>, vector<8x32xf32>,
    %c0_i32_46 = arith.constant 0 : i32
    %135 = arith.cmpi eq, %arg1, %c0_i32_46 : i32
    %136 = arith.extui %135 : i1 to i32
    %c0_i32_47 = arith.constant 0 : i32
    %137 = arith.cmpi ne, %136, %c0_i32_47 : i32
    scf.if %137 {
      %c0_48 = arith.constant 0 : index
      %c0_49 = arith.constant 0 : index
      %138 = vector.load %arg7[%c0_48, %c0_49] : memref<8x32xf32, #tpu.memory_space<vmem>>, vector<8x32xf32>
      %c0_50 = arith.constant 0 : index
      %c0_51 = arith.constant 0 : index
      %139 = vector.load %arg5[%c0_50, %c0_51] : memref<1x32xf32, #tpu.memory_space<vmem>>, vector<1x32xf32>
      %140 = vector.broadcast %139 : vector<1x32xf32> to vector<8x32xf32>
      %141 = arith.addf %138, %140 : vector<8x32xf32>
      %c0_52 = arith.constant 0 : index
      %c0_53 = arith.constant 0 : index
      %c0_54 = arith.constant 0 : index
      %142 = vector.load %arg6[%c0_52, %c0_53, %c0_54] : memref<1x8x32xf32, #tpu.memory_space<vmem>>, vector<1x8x32xf32>
      %143 = vector.shape_cast %142 : vector<1x8x32xf32> to vector<8x32xf32>
      %144 = vector.shape_cast %141 : vector<8x32xf32> to vector<1x8x32xf32>
      tpu.vector_store %arg6[%c0_52, %c0_53, %c0_54], %144 {strides = array<i32>} : memref<1x8x32xf32, #tpu.memory_space<vmem>>, vector<1x8x32xf32>,
    } else {
    }
    return
  }
  func.func @transform_0(%arg0: i32, %arg1: i32) -> (i32, i32, i32) {
    %c0_i32 = arith.constant 0 : i32
    %c0_i32_0 = arith.constant 0 : i32
    %c0_i32_1 = arith.constant 0 : i32
    return %arg0, %c0_i32, %c0_i32_0 : i32, i32, i32
  }
  func.func @transform_1(%arg0: i32, %arg1: i32) -> (i32, i32, i32) {
    %c0_i32 = arith.constant 0 : i32
    %c0_i32_0 = arith.constant 0 : i32
    %c0_i32_1 = arith.constant 0 : i32
    return %arg1, %c0_i32, %c0_i32_0 : i32, i32, i32
  }
  func.func @transform_2(%arg0: i32, %arg1: i32) -> (i32, i32, i32) {
    %c0_i32 = arith.constant 0 : i32
    %c0_i32_0 = arith.constant 0 : i32
    %c0_i32_1 = arith.constant 0 : i32
    return %arg1, %c0_i32, %c0_i32_0 : i32, i32, i32
  }
  func.func @transform_3(%arg0: i32, %arg1: i32) -> (i32, i32) {
    %c0_i32 = arith.constant 0 : i32
    %c0_i32_0 = arith.constant 0 : i32
    %c0_i32_1 = arith.constant 0 : i32
    return %c0_i32, %c0_i32_0 : i32, i32
  }
  func.func @transform_4(%arg0: i32, %arg1: i32) -> (i32, i32, i32) {
    %c0_i32 = arith.constant 0 : i32
    %c0_i32_0 = arith.constant 0 : i32
    %c0_i32_1 = arith.constant 0 : i32
    return %arg0, %c0_i32, %c0_i32_0 : i32, i32, i32
  }
}

</mosaic_0001>

<bundles_post_ra>
// kernel: tpu_custom_call.1
= control target key start
LH: loop header
LB: loop body
LE: loop exit
PB: predicated region body
PF: predicated region fallthrough
CT: control target
= control target key end

     0   :  { %9 = vsyncpa [#allocation4], 0  ;;  %s2936_s0 = inlined_call_operand.hbm [shape: f32[2,8,32], index: 0, kind: input, shape index: {}]   ;;  %s2937_s1 = inlined_call_operand.hbm [shape: f32[1,32,96], index: 1, kind: input, shape index: {}]   ;;  %s2938_s2 = inlined_call_operand.hbm [shape: f32[1,32,32], index: 2, kind: input, shape index: {}]   ;;  %s2939_s3 = inlined_call_operand.vmem [shape: f32[1,32], index: 3, kind: input, shape index: {}]   ;;  %s2940_s4 = inlined_call_operand.hbm [shape: f32[2,8,32], index: 4, kind: output, shape index: {}]  }
   0x1   :  { %11 = vsyncpa [#allocation4 + $0x1], 0 }
   0x2   :  { %12 = vsyncpa [#allocation7], 0 }
   0x3   :  { %13 = vsyncpa [#allocation5], 0 }
   0x4   :  { %15 = vsyncpa [#allocation5 + $0x1], 0  ;;  %s2512_s15 = smov 0   ;;  %s2514_s16 = smov 0  }
   0x5   :  { %s2516_s17 = smov 0   ;;  %s2518_s18 = smov 0  }
   0x6   :  { %s2520_s19 = smov 0   ;;  %s2522_s20 = smov 0  }
   0x7 LB: > { %s1924_s21 = sadd.s32 4294967295, %s2446_s20   ;;  %s1925_s22 = sadd.s32 4294967294, %s2446_s20   ;;  %s2446_s20 = sphi %s2522_s20, %s21_s20   ;;  %s2442_s19 = sphi %s2520_s19, %s2962_s19   ;;  %s2438_s18 = sphi %s2518_s18, %s2961_s18   ;;  %s2434_s17 = sphi %s2516_s17, %s2960_s17   ;;  %s2430_s16 = sphi %s2514_s16, %s2959_s16   ;;  %s2426_s15 = sphi %s2512_s15, %s2958_s15  }
   0x8   : > { %p53_p0 = scmp.ne.s32.totalorder %s2430_s16, %s2426_s15  ;;  %p2546_p1 = scmp.eq.s32.totalorder %s1924_s21, 0 }
   0x9   : > { %p2550_p2 = scmp.eq.s32.totalorder %s1924_s21, 1  ;;  %p156_p3 = scmp.eq.s32.totalorder %s1925_s22, 1 }
   0xa   : > { %s2945_s23 = scalar_select %p2546_p1, 1, 0 }
   0xb   : > { %p2556_p4 = por %p2546_p1, %p53_p0  ;;  %p1926_p5 = scmp.ge.s32.totalorder %s2446_s20, 1 }
   0xc   : > { %p2561_p6 = por %p156_p3, %p53_p0  ;;  %p163_p7 = scmp.lt.s32.totalorder %s2446_s20, 3 }
   0xd   : > { %s2947_s25 = scalar_select %p2556_p4, 1, 0 }
   0xe   : > { %s2948_s26 = scalar_select %p2561_p6, 1, 0 }
   0xf   : > { %p2566_p8 = pnand %p1926_p5, %p163_p7  ;;  %s2448_s28 = smov [#allocation6]  }
  0x10   : > { %s178_s29 = sshll.u32 %s2448_s28, 4  ;;  %s2449_s5 = smov [#allocation8]   ;;  %s2570_s29 = int_to_ptr.vmem [resolvable:$true] %s178_s29 }
  0x11   : > { %p2136_p9 = pneg %p2566_p8  ;;  %s194_s6 = sshll.u32 %s2449_s5, 4  ;;  %s2581_s6 = int_to_ptr.vmem [resolvable:$true] %s194_s6 }
  0x12   : > { %s2274_s9 = scalar_lea.hbm %s2937_s1, 512 }
  0x13   : > { %p2577_p11 = pnand %p2136_p9, %p2546_p1  ;;  %p2275_p12 = scmp.ne.s32.totalorder %s2937_s1, %s2274_s9 }
  0x14   : > { %p2281_p5 = scmp.lt.u32.totalorder %s2274_s9, %s2937_s1 }
  0x15   : > { %p2276_p13 = pneg %p2577_p11 }
  0x17   : > { %p2277_p0 = pnand %p2276_p13, %p2275_p12 }
  0x19   : > { %p2278_p3 = pneg %p2277_p0 }
  0x1b   : > { %p2283_p7 = pnand %p2281_p5, %p2278_p3 }
  0x1d   : > { %2286 = shalt.err (!%p2283_p7)
}
  0x1e   : > { %s2287_s14 = scalar_lea.vmem %s2570_s29, 512  ;;  %p2295_p1 = scmp.lt.s32.totalorder %s2570_s29, %s2570_s29 }
  0x1f   : > { %p2288_p9 = scmp.ne.s32.totalorder %s2570_s29, %s2287_s14  ;;  %p2296_p12 = scmp.lt.s32.totalorder %s2287_s14, %s2287_s14 }
  0x21   : > { %p2290_p10 = pnand %p2288_p9, %p2276_p13  ;;  %p2297_p0 = por %p2296_p12, %p2295_p1 }
  0x23   : > { %p2291_p6 = pneg %p2290_p10 }
  0x25   : > { %p2298_p4 = pnand %p2297_p0, %p2291_p6 }
  0x27   : > { %2301 = shalt.err (!%p2298_p4)
}
  0x28   : > { %s2450_s21 = smov 128   ;;  %s2451_s22 = smov 8  }
  0x29   : > { %2139 = dma.hbm_to_vmem [thread:$0]  (!%p2577_p11), %s2937_s1, 512, %s2570_s29, [#allocation7], %s2450_s21, %s2450_s21, %s2451_s22  }
  0x2a   : > { %s2302_s9 = scalar_lea.hbm %s2938_s2, 512 }
  0x2b   : > { %p2303_p1 = scmp.ne.s32.totalorder %s2938_s2, %s2302_s9  ;;  %p2309_p10 = scmp.lt.u32.totalorder %s2302_s9, %s2938_s2 }
  0x2d   : > { %p2305_p4 = pnand %p2303_p1, %p2276_p13 }
  0x2f   : > { %p2306_p6 = pneg %p2305_p4 }
  0x31   : > { %p2311_p3 = pnand %p2309_p10, %p2306_p6 }
  0x33   : > { %2314 = shalt.err (!%p2311_p3)
}
  0x34   : > { %s2315_s29 = scalar_lea.vmem %s2581_s6, 512  ;;  %p2323_p12 = scmp.lt.s32.totalorder %s2581_s6, %s2581_s6 }
  0x35   : > { %p2316_p5 = scmp.ne.s32.totalorder %s2581_s6, %s2315_s29  ;;  %p2324_p0 = scmp.lt.s32.totalorder %s2315_s29, %s2315_s29 }
  0x37   : > { %p2318_p7 = pnand %p2316_p5, %p2276_p13  ;;  %p2325_p1 = por %p2324_p0, %p2323_p12 }
  0x39   : > { %p2319_p9 = pneg %p2318_p7 }
  0x3b   : > { %p2326_p4 = pnand %p2325_p1, %p2319_p9 }
  0x3d   : > { %2329 = shalt.err (!%p2326_p4)
}
  0x3e   : > { %2142 = dma.hbm_to_vmem [thread:$0]  (!%p2577_p11), %s2938_s2, 512, %s2581_s6, [#allocation7], %s2450_s21, %s2450_s21, %s2451_s22  }
  0x3f   : > { %s33_s5 = sadd.s32 1, %s2442_s19  ;;  %s40_s7 = sadd.s32 1, %s2434_s17 }
  0x40   : > { %p35_p13 = scmp.ge.s32.totalorder %s33_s5, 2  ;;  %p47_p6 = scmp.ne.s32.totalorder %s2434_s17, %s2430_s16 }
  0x41   : > { %p48_p10 = scmp.eq.s32.totalorder %s2446_s20, 0  ;;  %p2153_p3 = scmp.lt.s32.totalorder %s2446_s20, 2 }
  0x42   : > { %s2964_s5 = smov (%p35_p13, %s33_s5), 0  ;;  %p2645_p7 = por %p2550_p2, %p47_p6 }
  0x43   : > { %p49_p5 = por %p48_p10, %p47_p6  ;;  %s37_s8 = ssub.s32 %s2442_s19, %s2964_s5 }
  0x44   : > { %s2951_s30 = scalar_select %p2645_p7, 1, 0 }
  0x45   : > { %s211_s9 = sand.u32 1, %s2434_s17   ;;  %p38_p9 = scmp.eq.s32.totalorder %s37_s8, 0 }
  0x46   : > { %s1930_s6 = sshll.u32 %s211_s9, 3  ;;  %s1931_s21 = sshll.u32 %s2442_s19, 7 }
  0x47   : > { %s2654_s22 = scalar_select %p38_p9, %s2434_s17, %s40_s7  }
  0x48   : > { %s2659_s12 = scalar_lea.hbm %s2936_s0, %s1931_s21  ;;  %s215_s24 = scalar_lea.vmem [#allocation3], %s1930_s6 }
  0x49   : > { %s222_s13 = sshll.u32 %s215_s24, 4  ;;  %p2663_p2 = pnand %p2153_p3, %p49_p5  ;;  %s2667_s13 = int_to_ptr.vmem [resolvable:$true] %s222_s13 }
  0x4a   : > { %s212_s14 = scalar_lea.sflag [#allocation4], %s211_s9  ;;  %s2330_s28 = scalar_lea.hbm %s2659_s12, 128 }
  0x4b   : > { %p2331_p11 = scmp.ne.s32.totalorder %s2659_s12, %s2330_s28  ;;  %p2332_p12 = pneg %p2663_p2 }
  0x4c   : > { %s2335_s6 = scalar_lea.hbm %s2936_s0, 256  ;;  %p2336_p4 = scmp.lt.u32.totalorder %s2659_s12, %s2936_s0 }
  0x4d   : > { %p2333_p0 = pnand %p2332_p12, %p2331_p11  ;;  %p2337_p13 = scmp.lt.u32.totalorder %s2335_s6, %s2330_s28 }
  0x4e   : > { %p2339_p10 = scmp.lt.u32.totalorder %s2330_s28, %s2659_s12 }
  0x4f   : > { %p2334_p1 = pneg %p2333_p0  ;;  %p2338_p6 = por %p2337_p13, %p2336_p4 }
  0x51   : > { %p2340_p3 = por %p2339_p10, %p2338_p6 }
  0x53   : > { %p2341_p5 = pnand %p2340_p3, %p2334_p1 }
  0x55   : > { %2344 = shalt.err (!%p2341_p5)
}
  0x56   : > { %s2345_s9 = scalar_lea.vmem %s2667_s13, 128  ;;  %s2452_s11 = smov [#allocation3]  }
  0x57   : > { %p2346_p9 = scmp.ne.s32.totalorder %s2667_s13, %s2345_s9  ;;  %s2350_s24 = sshll.u32 %s2452_s11, 4  ;;  %s2351_s24 = int_to_ptr.vmem [resolvable:$false] %s2350_s24 }
  0x58   : > { %s2352_s7 = scalar_lea.vmem %s2351_s24, 256  ;;  %p2353_p7 = scmp.lt.s32.totalorder %s2667_s13, %s2351_s24 }
  0x59   : > { %p2348_p11 = pnand %p2346_p9, %p2332_p12  ;;  %p2354_p4 = scmp.lt.s32.totalorder %s2352_s7, %s2345_s9 }
  0x5b   : > { %p2349_p0 = pneg %p2348_p11  ;;  %p2355_p13 = por %p2354_p4, %p2353_p7 }
  0x5d   : > { %p2356_p6 = pnand %p2355_p13, %p2349_p0 }
  0x5f   : > { %2359 = shalt.err (!%p2356_p6)
}
  0x60   : > { %2146 = dma.hbm_to_vmem [thread:$0]  (!%p2663_p2), %s2659_s12, 128, %s2667_s13, %s212_s14  }
  0x61   : > { %231 = sbr.rel (%p2566_p8) target bundleno = 2111 (0x83f), region = 36  ;;  %s2697_s28 = sand.u32 (!%p2566_p8), 1, %s2430_s16  }
  0x62   : > { %s1933_s8 = sshll.u32 (!%p2566_p8), %s2697_s28, 3  ;;  %s234_s6 = scalar_lea.sflag (!%p2566_p8), [#allocation4], %s2697_s28 }
  0x63   : > { %s237_s21 = scalar_lea.vmem (!%p2566_p8), [#allocation3], %s1933_s8  ;;  %p2953_p7 = scmp.ne.s32.totalorder (!%p2566_p8), %s2947_s25, 0 }
  0x68   : > { %2413 = dma.done.wait (%p2953_p7), %s234_s6, 128  }
  0x69   : > { %2415 = vsyncadd (%p2953_p7), %s234_s6, 4294967168  ;;  %p2954_p2 = scmp.ne.s32.totalorder %s2945_s23, 0 }
  0x6b   : > { %2417 = dma.done.wait (%p2954_p2), [#allocation7], 1024  }
  0x6c   : > { %2419 = vsyncadd (%p2954_p2), [#allocation7], 4294966272  ;;  %vm274_vm0 = vcmask 261120   ;;  %v2453_v0 = vmov 0.0|0.0   ;;  %vm2454_vm1 = vmmov 0   ;;  %v2455_v1 = vmov 0.0  }
  0x6d   : > { %2112 = vmatprep.subr.bf16.mxu0 %v2453_v0  ;;  %2018 = vmatprep.mubr.msk.f32.mxu0 %vm2454_vm1, %v2455_v1  ;;  %275 = vst.msk [vmem:[#allocation2] sm:$0xff] %vm274_vm0, %v2455_v1  ;;  %v277_v2 = vld [vmem:[#allocation6] sm:$0xff]  ;;  %v278_v3 = vld [vmem:[#allocation6 + $0x8] sm:$0xff]  ;;  %v279_v4 = vld [vmem:[#allocation6 + $0x10] sm:$0xff]  ;;  %s2456_s23 = smov 64   ;;  %s2457_s25 = smov 96  }
  0x6e   : > { %2021 = vmatprep.subr.mxu1 %v2455_v1  ;;  %2023 = vmatprep.mubr.msk.f32.mxu1 %vm2454_vm1, %v2455_v1  ;;  %v2113_v5 = vpack.c.bf16 %v278_v3, %v277_v2  ;;  %v280_v6 = vld [vmem:[#allocation6 + $0x18] sm:$0xff]  ;;  %s2458_s27 = smov 92   ;;  %s2459_s12 = smov 124   ;;  %vm358_vm2 = vcmask 31744   ;;  %vm433_vm3 = vcmask 64512   ;;  %vm1706_vm4 = vcmask 97280  }
  0x6f   : > { %v2116_v7 = vpack.c.bf16 %v280_v6, %v279_v4  ;;  %v276_v8 = vld [vmem:[%s237_s21] sm:$0xff]  ;;  %s2460_s13 = smov 88   ;;  %s2461_s29 = smov 120   ;;  %vm1708_vm5 = vcmask 130048   ;;  %vm1710_vm6 = vcmask 162816   ;;  %vm1712_vm7 = vcmask 195584  }
  0x70   : > { %2114 = vmatpush3.bf16.msra.mxu0 %v2113_v5  ;;  %s2462_s14 = smov 116   ;;  %s2463_s10 = smov 84   ;;  %vm1714_vm8 = vcmask 228352  }
  0x71   : > { %2115 = vmatprep.subr.bf16.mxu0 %v2453_v0  ;;  %s2464_s9 = smov 72   ;;  %s2465_s11 = smov 68  }
  0x72   : > { %s2466_s24 = smov 80   ;;  %s2467_s7 = smov 112  }
  0x73   : > { %s2468_s6 = smov 76   ;;  %s2469_s21 = smov 108  }
  0x74   : > { %2117 = vmatpush3.bf16.msra.mxu0 %v2116_v7  ;;  %p2955_p12 = scmp.ne.s32.totalorder %s2951_s30, 0 }
  0x75   : > { %2041 = vmatprep.subr.mxu0 %v2455_v1 }
  0x77   : > { %2019 = vmatmul.mubr.msk.f32.vlgmr.msra.gmra.mrb[0].mxu0 %vm274_vm0, %v276_v8 }
  0x78   : > { %2043 = vmatprep.mubr.msk.f32.mxu0 %vm2454_vm1, %v2455_v1 }
 0x14a   : > { %v2724_v9 = vpop.f32.mrb[0].mxu0 }
 0x14b   : > { %445 = vrot.lane.b32.xlu1 %v2724_v9, %s2456_s23  ;;  %356 = vrot.lane.b32.xlu0 %v2724_v9, %s2457_s25  ;;  %v2020_v10 = vpop.f32.mrb[1].mxu0  ;;  %s2470_s23 = smov 104   ;;  %s2471_s25 = smov 100  }
 0x14f   : > { %523 = vrot.lane.b32.xlu1 %v2724_v9, %s2458_s27  ;;  %s2472_s27 = smov 60  }
 0x153   : > { %521 = vrot.lane.b32.xlu1 %v2724_v9, %s2459_s12  ;;  %s2473_s12 = smov 52  }
 0x157   : > { %688 = vrot.lane.b32.xlu1 %v2724_v9, %s2460_s13  ;;  %s2474_s13 = smov 48  }
 0x15b   : > { %686 = vrot.lane.b32.xlu1 %v2724_v9, %s2461_s29  ;;  %s2475_s29 = smov 56  }
 0x15f   : > { %851 = vrot.lane.b32.xlu1 %v2724_v9, %s2462_s14  ;;  %s2476_s14 = smov 40  }
 0x1bd   : > { %v446_v11 = vpop.permute.xlu1 %445  ;;  %v357_v12 = vpop.permute.xlu0 %356 }
 0x1be   : > { %2022 = vmatpush3.xpose.msk.msra.mxu1 %vm358_vm2, %v357_v12 }
 0x1bf   : > { %2026 = vmatprep.subr.mxu1 %v2455_v1 }
 0x1c1   : > { %v2735_v13 = vpop.permute.xlu1 %523  ;;  %2024 = vmatmul.mubr.msk.f32.vlgmr.msra.gmra.mrb[0].mxu1 %vm358_vm2, %v2724_v9 }
 0x1c2   : > { %2027 = vmatpush3.msra.mxu1 %v446_v11  ;;  %2028 = vmatprep.mubr.msk.f32.mxu1 %vm2454_vm1, %v2455_v1 }
 0x1c3   : > { %2031 = vmatprep.subr.mxu1 %v2455_v1 }
 0x1c5   : > { %v2742_v14 = vpop.permute.xlu1 %521 }
 0x1c9   : > { %v689_v15 = vpop.permute.xlu1 %688 }
 0x1ca   : > { %2042 = vmatpush3.xpose.msk.msra.mxu0 %vm358_vm2, %v689_v15 }
 0x1cb   : > { %2051 = vmatprep.subr.mxu0 %v2455_v1 }
 0x1cd   : > { %v687_v16 = vpop.permute.xlu1 %686 }
 0x1ce   : > { %2044 = vmatmul.mubr.msk.f32.vlgmr.msra.gmra.mrb[2].mxu0 %vm358_vm2, %v687_v16 }
 0x1cf   : > { %2053 = vmatprep.mubr.msk.f32.mxu0 %vm2454_vm1, %v2455_v1 }
 0x1d1   : > { %v852_v26 = vpop.permute.xlu1 %851 }
 0x294   : > { %v429_v17 = vpop.f32.mrb[0].mxu1 }
 0x295   : > { %v2025_v18 = vpop.f32.mrb[1].mxu1  ;;  %v434_v19 = vsel %vm433_vm3, %v429_v17, -inf }
 0x296   : > { %435 = vmax.xlane.f32.xlu0 %v434_v19 }
 0x2a1   : > { %v2750_v20 = vpop.f32.mrb[2].mxu0 }
 0x2a2   : > { %v2045_v21 = vpop.f32.mrb[3].mxu0  ;;  %v764_v29 = vsel %vm433_vm3, %v2750_v20, -inf }
 0x2ac   : > { %853 = vrot.lane.b32.xlu0 %v2724_v9, %s2463_s10  ;;  %s2477_s10 = smov 44  }
 0x2b0   : > { %1348 = vrot.lane.b32.xlu0 %v2724_v9, %s2464_s9  ;;  %s2478_s9 = smov 36  }
 0x2b4   : > { %1513 = vrot.lane.b32.xlu0 %v2724_v9, %s2465_s11  ;;  %s2479_s11 = smov 4  }
 0x323   : > { %v436_v22 = vpop.xlane.xlu0 %435 }
 0x324   : > { %v437_v23 = vsub.f32 %v429_v17, %v436_v22 }
 0x326   : > { %v438_v24 = vmul.f32 1.442695, %v437_v23 }
 0x327   : > { %v854_v25 = vpop.permute.xlu0 %853 }
 0x328   : > { %2242 = vpow2.f32 %v438_v24  ;;  %2052 = vmatpush3.xpose.msk.msra.mxu0 %vm358_vm2, %v854_v25 }
 0x329   : > { %2061 = vmatprep.subr.mxu0 %v2455_v1 }
 0x32b   : > { %2054 = vmatmul.mubr.msk.f32.vlgmr.msra.gmra.mrb[4].mxu0 %vm358_vm2, %v852_v26  ;;  %v1349_v36 = vpop.permute.xlu0 %1348 }
 0x32c   : > { %2063 = vmatprep.mubr.msk.f32.mxu0 %vm2454_vm1, %v2455_v1 }
 0x32f   : > { %v1514_v39 = vpop.permute.xlu0 %1513 }
 0x332   : > { %v2243_v27 = vpop.eup %2242 }
 0x333   : > { %v440_v28 = vsel %vm433_vm3, %v2243_v27, 0.0 }
 0x334   : > { %441 = vadd.xlane.f32.xlu1 %v440_v28 }
 0x345   : > { %1018 = vrot.lane.b32.xlu1 %v2724_v9, %s2466_s24  ;;  %s2480_s24 = smov 8  }
 0x349   : > { %1016 = vrot.lane.b32.xlu1 %v2724_v9, %s2467_s7  ;;  %s2481_s7 = smov 12  }
 0x34d   : > { %1183 = vrot.lane.b32.xlu1 %v2724_v9, %s2468_s6  ;;  %s2482_s6 = smov 16  }
 0x351   : > { %1181 = vrot.lane.b32.xlu1 %v2724_v9, %s2469_s21  ;;  %s2483_s21 = smov 20  }
 0x355   : > { %1346 = vrot.lane.b32.xlu1 %v2724_v9, %s2470_s23  ;;  %s2484_s23 = smov 24  }
 0x359   : > { %1511 = vrot.lane.b32.xlu1 %v2724_v9, %s2471_s25  ;;  %s2485_s25 = smov 28  }
 0x37d   : > { %765 = vmax.xlane.f32.xlu1 %v764_v29 }
 0x3c1   : > { %v442_v30 = vpop.xlane.xlu1 %441 }
 0x3c2   : > { %2244 = vrcp.f32 %v442_v30 }
 0x3c5   : > { %v1019_v31 = vpop.permute.xlu1 %1018 }
 0x3c6   : > { %2062 = vmatpush3.xpose.msk.msra.mxu0 %vm358_vm2, %v1019_v31 }
 0x3c7   : > { %2071 = vmatprep.subr.mxu0 %v2455_v1 }
 0x3c9   : > { %v1017_v32 = vpop.permute.xlu1 %1016 }
 0x3ca   : > { %2064 = vmatmul.mubr.msk.f32.vlgmr.msra.gmra.mrb[6].mxu0 %vm358_vm2, %v1017_v32 }
 0x3cb   : > { %2073 = vmatprep.mubr.msk.f32.mxu0 %vm2454_vm1, %v2455_v1 }
 0x3cc   : > { %v2245_v33 = vpop.eup %2244 }
 0x3cd   : > { %v444_v34 = vmul.f32 %v2245_v33, %v2243_v27  ;;  %v1184_v35 = vpop.permute.xlu1 %1183 }
 0x3ce   : > { %2072 = vmatpush3.xpose.msk.msra.mxu0 %vm358_vm2, %v1184_v35 }
 0x3cf   : > { %2029 = vmatmul.mubr.msk.f32.vlgmr.msra.gmra.mrb[2].mxu1 %vm433_vm3, %v444_v34  ;;  %2081 = vmatprep.subr.mxu0 %v2455_v1 }
 0x3d0   : > { %2032 = vmatpush3.xpose.msk.msra.mxu1 %vm358_vm2, %v2735_v13  ;;  %2033 = vmatprep.mubr.msk.f32.mxu1 %vm2454_vm1, %v2455_v1 }
 0x3d1   : > { %v1182_v37 = vpop.permute.xlu1 %1181  ;;  %2036 = vmatprep.subr.mxu1 %v2455_v1 }
 0x3d2   : > { %2074 = vmatmul.mubr.msk.f32.vlgmr.msra.gmra.mrb[8].mxu0 %vm358_vm2, %v1182_v37 }
 0x3d3   : > { %2082 = vmatpush3.xpose.msk.msra.mxu0 %vm358_vm2, %v1349_v36  ;;  %2034 = vmatmul.mubr.msk.f32.vlgmr.msra.gmra.mrb[4].mxu1 %vm358_vm2, %v2742_v14 }
 0x3d4   : > { %2083 = vmatprep.mubr.msk.f32.mxu0 %vm2454_vm1, %v2455_v1  ;;  %2091 = vmatprep.subr.mxu0 %v2455_v1 }
 0x3d5   : > { %v1347_v38 = vpop.permute.xlu1 %1346  ;;  %2038 = vmatprep.mubr.msk.f32.mxu1 %vm2454_vm1, %v2455_v1 }
 0x3d6   : > { %2084 = vmatmul.mubr.msk.f32.vlgmr.msra.gmra.mrb[10].mxu0 %vm358_vm2, %v1347_v38 }
 0x3d7   : > { %2092 = vmatpush3.xpose.msk.msra.mxu0 %vm358_vm2, %v1514_v39  ;;  %2093 = vmatprep.mubr.msk.f32.mxu0 %vm2454_vm1, %v2455_v1 }
 0x3d8   : > { %2118 = vmatprep.subr.bf16.mxu0 %v2453_v0 }
 0x3d9   : > { %v1512_v40 = vpop.permute.xlu1 %1511 }
 0x3da   : > { %2094 = vmatmul.mubr.msk.f32.vlgmr.msra.gmra.mrb[12].mxu0 %vm358_vm2, %v1512_v40 }
 0x3db   : > { %2109 = vmatprep.mubr.msk.f32.mxu0 %vm2454_vm1, %v2455_v1 }
 0x3fe   : > { %v925_v41 = vpop.f32.mrb[4].mxu0 }
 0x3ff   : > { %v2055_v42 = vpop.f32.mrb[5].mxu0  ;;  %v929_v58 = vsel %vm433_vm3, %v925_v41, -inf }
 0x40a   : > { %v766_v43 = vpop.xlane.xlu1 %765 }
 0x40b   : > { %v767_v44 = vsub.f32 %v2750_v20, %v766_v43 }
 0x40d   : > { %v768_v47 = vmul.f32 1.442695, %v767_v44 }
 0x40f   : > { %2246 = vpow2.f32 %v768_v47 }
 0x419   : > { %v2806_v62 = vpop.eup %2246 }
 0x41a   : > { %v770_v2 = vsel %vm433_vm3, %v2806_v62, 0.0 }
 0x49d   : > { %v1090_v45 = vpop.f32.mrb[6].mxu0 }
 0x49e   : > { %v2065_v46 = vpop.f32.mrb[7].mxu0  ;;  %v1094_v63 = vsel %vm433_vm3, %v1090_v45, -inf }
 0x4a2   : > { %v2800_v48 = vpop.f32.mrb[2].mxu1 }
 0x4a3   : > { %v2030_v49 = vpop.f32.mrb[3].mxu1 }
 0x4a5   : > { %v1255_v50 = vpop.f32.mrb[8].mxu0 }
 0x4a6   : > { %v595_v51 = vpop.f32.mrb[4].mxu1  ;;  %v2075_v52 = vpop.f32.mrb[9].mxu0  ;;  %v1259_v53 = vsel %vm433_vm3, %v1255_v50, -inf }
 0x4a7   : > { %v2035_v54 = vpop.f32.mrb[5].mxu1  ;;  %1260 = vmax.xlane.f32.xlu1 %v1259_v53  ;;  %v599_v55 = vsel %vm433_vm3, %v595_v51, -inf }
 0x4a8   : > { %600 = vmax.xlane.f32.xlu0 %v599_v55 }
 0x4a9   : > { %v1420_v56 = vpop.f32.mrb[10].mxu0 }
 0x4aa   : > { %v2085_v57 = vpop.f32.mrb[11].mxu0  ;;  %v1424_v3 = vsel %vm433_vm3, %v1420_v56, -inf }
 0x4ac   : > { %930 = vmax.xlane.f32.xlu0 %v929_v58 }
 0x4ad   : > { %v1585_v59 = vpop.f32.mrb[12].mxu0 }
 0x4ae   : > { %v2095_v60 = vpop.f32.mrb[13].mxu0  ;;  %v1589_v61 = vsel %vm433_vm3, %v1585_v59, -inf }
 0x4af   : > { %1590 = vmax.xlane.f32.xlu1 %v1589_v61 }
 0x4b0   : > { %1095 = vmax.xlane.f32.xlu0 %v1094_v63 }
 0x4b3   : > { %771 = vadd.xlane.f32.xlu1 %v770_v2 }
 0x4b4   : > { %1425 = vmax.xlane.f32.xlu0 %v1424_v3 }
 0x534   : > { %v1261_v4 = vpop.xlane.xlu1 %1260 }
 0x535   : > { %v601_v5 = vpop.xlane.xlu0 %600  ;;  %v1262_v6 = vsub.f32 %v1255_v50, %v1261_v4  ;;  %v1717_v4 = vld [vmem:[#allocation8] sm:$0xff] }
 0x536   : > { %v602_v16 = vsub.f32 %v595_v51, %v601_v5  ;;  %v1718_v5 = vld [vmem:[#allocation8 + $0x8] sm:$0xff] }
 0x537   : > { %v1263_v10 = vmul.f32 1.442695, %v1262_v6 }
 0x538   : > { %v603_v21 = vmul.f32 1.442695, %v602_v16 }
 0x539   : > { %v931_v7 = vpop.xlane.xlu0 %930 }
 0x53a   : > { %v932_v8 = vsub.f32 %v925_v41, %v931_v7  ;;  %v2119_v7 = vpack.c.bf16 %v1718_v5, %v1717_v4 }
 0x53c   : > { %v933_v11 = vmul.f32 1.442695, %v932_v8  ;;  %v1591_v12 = vpop.xlane.xlu1 %1590  ;;  %2120 = vmatpush3.bf16.msra.mxu0 %v2119_v7 }
 0x53d   : > { %v1592_v13 = vsub.f32 %v1585_v59, %v1591_v12  ;;  %v1096_v14 = vpop.xlane.xlu0 %1095  ;;  %2121 = vmatprep.subr.bf16.mxu0 %v2453_v0 }
 0x53e   : > { %2248 = vpow2.f32 %v933_v11  ;;  %v1097_v15 = vsub.f32 %v1090_v45, %v1096_v14 }
 0x53f   : > { %2250 = vpow2.f32 %v1263_v10  ;;  %v1593_v17 = vmul.f32 1.442695, %v1592_v13  ;;  %v1720_v10 = vld [vmem:[#allocation8 + $0x18] sm:$0xff] }
 0x540   : > { %v1098_v18 = vmul.f32 1.442695, %v1097_v15  ;;  %v772_v35 = vpop.xlane.xlu1 %771 }
 0x541   : > { %v1426_v19 = vpop.xlane.xlu0 %1425 }
 0x542   : > { %2252 = vpow2.f32 %v1098_v18  ;;  %v1427_v20 = vsub.f32 %v1420_v56, %v1426_v19 }
 0x543   : > { %2254 = vpow2.f32 %v1593_v17 }
 0x544   : > { %v1428_v22 = vmul.f32 1.442695, %v1427_v20 }
 0x546   : > { %2256 = vpow2.f32 %v1428_v22 }
 0x547   : > { %2258 = vpow2.f32 %v603_v21 }
 0x548   : > { %v2812_v23 = vpop.eup %2248 }
 0x549   : > { %v935_v24 = vsel %vm433_vm3, %v2812_v23, 0.0  ;;  %v2816_v25 = vpop.eup %2250 }
 0x54a   : > { %936 = vadd.xlane.f32.xlu0 %v935_v24  ;;  %v1265_v27 = vsel %vm433_vm3, %v2816_v25, 0.0 }
 0x54c   : > { %v2818_v26 = vpop.eup %2252 }
 0x54d   : > { %v1100_v28 = vsel %vm433_vm3, %v2818_v26, 0.0  ;;  %v2824_v29 = vpop.eup %2254 }
 0x54e   : > { %1266 = vadd.xlane.f32.xlu0 %v1265_v27  ;;  %1101 = vadd.xlane.f32.xlu1 %v1100_v28  ;;  %v1595_v32 = vsel %vm433_vm3, %v2824_v29, 0.0 }
 0x550   : > { %v2826_v30 = vpop.eup %2256 }
 0x551   : > { %v1430_v31 = vsel %vm433_vm3, %v2826_v30, 0.0  ;;  %v2259_v33 = vpop.eup %2258 }
 0x552   : > { %1431 = vadd.xlane.f32.xlu1 %v1430_v31  ;;  %1596 = vadd.xlane.f32.xlu0 %v1595_v32  ;;  %v605_v34 = vsel %vm433_vm3, %v2259_v33, 0.0 }
 0x556   : > { %606 = vadd.xlane.f32.xlu0 %v605_v34 }
 0x563   : > { %610 = vrot.lane.b32.xlu1 %v2724_v9, %s2472_s27 }
 0x567   : > { %940 = vrot.lane.b32.xlu1 %v2724_v9, %s2473_s12 }
 0x56b   : > { %1105 = vrot.lane.b32.xlu1 %v2724_v9, %s2474_s13  ;;  %s1965_s13 = sshll.u32 %s2438_s18, 7  ;;  %s2486_s18 = smov [#allocation9]  }
 0x56c   : > { %775 = vrot.lane.b32.xlu0 %v2724_v9, %s2475_s29  ;;  %s269_s29 = scalar_lea.vmem [#allocation9], %s1933_s8  ;;  %s2364_s8 = sshll.u32 %s2486_s18, 4  ;;  %s2365_s8 = int_to_ptr.vmem [resolvable:$false] %s2364_s8 }
 0x56f   : > { %1435 = vrot.lane.b32.xlu1 %v2724_v9, %s2476_s14  ;;  %s1823_s14 = sshll.u32 %s269_s29, 4  ;;  %s2888_s14 = int_to_ptr.vmem [resolvable:$true] %s1823_s14 }
 0x570   : > { %1270 = vrot.lane.b32.xlu0 %v2724_v9, %s2477_s10  ;;  %p2367_p3 = scmp.lt.s32.totalorder %s2888_s14, %s2365_s8 }
 0x574   : > { %1600 = vrot.lane.b32.xlu0 %v2724_v9, %s2478_s9 }
 0x5d7   : > { %v937_v36 = vpop.xlane.xlu0 %936 }
 0x5db   : > { %v1267_v37 = vpop.xlane.xlu0 %1266  ;;  %v1102_v38 = vpop.xlane.xlu1 %1101 }
 0x5df   : > { %v1597_v39 = vpop.xlane.xlu0 %1596  ;;  %v1432_v40 = vpop.xlane.xlu1 %1431 }
 0x5e3   : > { %v607_v41 = vpop.xlane.xlu0 %606  ;;  %v611_v42 = vpop.permute.xlu1 %610 }
 0x5e4   : > { %2260 = vrcp.f32 %v607_v41  ;;  %2037 = vmatpush3.msra.mxu1 %v611_v42 }
 0x5e5   : > { %2046 = vmatprep.subr.mxu1 %v2455_v1  ;;  %2262 = vrcp.f32 %v772_v35 }
 0x5e6   : > { %2264 = vrcp.f32 %v937_v36 }
 0x5e7   : > { %2266 = vrcp.f32 %v1102_v38  ;;  %v776_v46 = vpop.permute.xlu0 %775  ;;  %v941_v47 = vpop.permute.xlu1 %940 }
 0x5e8   : > { %2268 = vrcp.f32 %v1267_v37  ;;  %v1963_v37 = vld [vmem:[%s2939_s3] ss:$0 sm:$0xff] }
 0x5e9   : > { %2270 = vrcp.f32 %v1432_v40 }
 0x5ea   : > { %2272 = vrcp.f32 %v1597_v39 }
 0x5eb   : > { %v1106_v52 = vpop.permute.xlu1 %1105  ;;  %v1271_v55 = vpop.permute.xlu0 %1270 }
 0x5ee   : > { %v2261_v43 = vpop.eup %2260 }
 0x5ef   : > { %v609_v44 = vmul.f32 %v2261_v43, %v2259_v33  ;;  %v2263_v45 = vpop.eup %2262  ;;  %v1436_v58 = vpop.permute.xlu1 %1435 }
 0x5f0   : > { %v774_v9 = vmul.f32 %v2263_v45, %v2806_v62  ;;  %v2265_v49 = vpop.eup %2264  ;;  %v1601_v61 = vpop.permute.xlu0 %1600 }
 0x5f1   : > { %2039 = vmatmul.mubr.msk.f32.vlgmr.msra.gmra.mrb[6].mxu1 %vm433_vm3, %v609_v44  ;;  %v939_v50 = vmul.f32 %v2265_v49, %v2812_v23  ;;  %v2267_v51 = vpop.eup %2266 }
 0x5f2   : > { %2047 = vmatpush3.msra.mxu1 %v776_v46  ;;  %2048 = vmatprep.mubr.msk.f32.mxu1 %vm2454_vm1, %v2455_v1  ;;  %v1104_v53 = vmul.f32 %v2267_v51, %v2818_v26  ;;  %v2269_v54 = vpop.eup %2268 }
 0x5f3   : > { %2056 = vmatprep.subr.mxu1 %v2455_v1  ;;  %v1269_v56 = vmul.f32 %v2269_v54, %v2816_v25  ;;  %v2271_v57 = vpop.eup %2270 }
 0x5f4   : > { %v1434_v59 = vmul.f32 %v2271_v57, %v2826_v30  ;;  %v2273_v60 = vpop.eup %2272 }
 0x5f5   : > { %2049 = vmatmul.mubr.msk.f32.vlgmr.msra.gmra.mrb[8].mxu1 %vm433_vm3, %v774_v9  ;;  %v1599_v62 = vmul.f32 %v2273_v60, %v2824_v29 }
 0x5f6   : > { %2057 = vmatpush3.msra.mxu1 %v941_v47  ;;  %2058 = vmatprep.mubr.msk.f32.mxu1 %vm2454_vm1, %v2455_v1 }
 0x5f7   : > { %2066 = vmatprep.subr.mxu1 %v2455_v1 }
 0x5f9   : > { %2059 = vmatmul.mubr.msk.f32.vlgmr.msra.gmra.mrb[10].mxu1 %vm433_vm3, %v939_v50 }
 0x5fa   : > { %2067 = vmatpush3.msra.mxu1 %v1106_v52  ;;  %2068 = vmatprep.mubr.msk.f32.mxu1 %vm2454_vm1, %v2455_v1 }
 0x5fb   : > { %2076 = vmatprep.subr.mxu1 %v2455_v1 }
 0x5fd   : > { %2069 = vmatmul.mubr.msk.f32.vlgmr.msra.gmra.mrb[12].mxu1 %vm433_vm3, %v1104_v53 }
 0x5fe   : > { %2077 = vmatpush3.msra.mxu1 %v1271_v55  ;;  %2078 = vmatprep.mubr.msk.f32.mxu1 %vm2454_vm1, %v2455_v1 }
 0x5ff   : > { %2086 = vmatprep.subr.mxu1 %v2455_v1 }
 0x601   : > { %2079 = vmatmul.mubr.msk.f32.vlgmr.msra.gmra.mrb[14].mxu1 %vm433_vm3, %v1269_v56 }
 0x602   : > { %2087 = vmatpush3.msra.mxu1 %v1436_v58  ;;  %2088 = vmatprep.mubr.msk.f32.mxu1 %vm2454_vm1, %v2455_v1 }
 0x603   : > { %2096 = vmatprep.subr.mxu1 %v2455_v1 }
 0x605   : > { %2089 = vmatmul.mubr.msk.f32.vlgmr.msra.gmra.mrb[16].mxu1 %vm433_vm3, %v1434_v59 }
 0x606   : > { %2097 = vmatpush3.msra.mxu1 %v1601_v61  ;;  %2098 = vmatprep.mubr.msk.f32.mxu1 %vm2454_vm1, %v2455_v1  ;;  %v1719_v1 = vld [vmem:[#allocation8 + $0x10] sm:$0xff] }
 0x607   : > { %v2122_v12 = vpack.c.bf16 %v1720_v10, %v1719_v1 }
 0x609   : > { %2099 = vmatmul.mubr.msk.f32.vlgmr.msra.gmra.mrb[18].mxu1 %vm433_vm3, %v1599_v62  ;;  %2123 = vmatpush3.bf16.msra.mxu0 %v2122_v12 }
 0x6c4   : > { %v682_v63 = vpop.f32.mrb[6].mxu1 }
 0x6c5   : > { %1677 = vrot.lane.b32.xlu1 %v682_v63, %s2479_s11  ;;  %v2040_v2 = vpop.f32.mrb[7].mxu1  ;;  %s2886_s11 = scalar_lea.hbm %s2940_s4, %s1965_s13 }
 0x6c8   : > { %v847_v3 = vpop.f32.mrb[8].mxu1 }
 0x6c9   : > { %1681 = vrot.lane.b32.xlu0 %v847_v3, %s2480_s24  ;;  %v2050_v6 = vpop.f32.mrb[9].mxu1  ;;  %s1810_s24 = scalar_lea.sflag [#allocation5], %s2697_s28 }
 0x6cc   : > { %v1012_v8 = vpop.f32.mrb[10].mxu1 }
 0x6cd   : > { %1685 = vrot.lane.b32.xlu1 %v1012_v8, %s2481_s7  ;;  %v2060_v11 = vpop.f32.mrb[11].mxu1  ;;  %s2360_s7 = scalar_lea.vmem %s2888_s14, 128 }
 0x6ce   : > { %p2361_p8 = scmp.ne.s32.totalorder %s2888_s14, %s2360_s7 }
 0x6d0   : > { %v1177_v13 = vpop.f32.mrb[12].mxu1  ;;  %p2362_p1 = pnand %p2361_p8, %p2955_p12 }
 0x6d1   : > { %1689 = vrot.lane.b32.xlu0 %v1177_v13, %s2482_s6  ;;  %v2070_v14 = vpop.f32.mrb[13].mxu1  ;;  %s2366_s6 = scalar_lea.vmem %s2365_s8, 256 }
 0x6d2   : > { %p2363_p10 = pneg %p2362_p1  ;;  %p2368_p5 = scmp.lt.s32.totalorder %s2366_s6, %s2360_s7 }
 0x6d4   : > { %v1342_v15 = vpop.f32.mrb[14].mxu1  ;;  %p2369_p9 = por %p2368_p5, %p2367_p3 }
 0x6d5   : > { %1693 = vrot.lane.b32.xlu1 %v1342_v15, %s2483_s21  ;;  %v2080_v16 = vpop.f32.mrb[15].mxu1 }
 0x6d6   : > { %p2370_p11 = pnand %p2369_p9, %p2363_p10 }
 0x6d8   : > { %v1507_v17 = vpop.f32.mrb[16].mxu1 }
 0x6d9   : > { %1697 = vrot.lane.b32.xlu0 %v1507_v17, %s2484_s23  ;;  %v2090_v18 = vpop.f32.mrb[17].mxu1 }
 0x6dc   : > { %v1672_v0 = vpop.f32.mrb[18].mxu1 }
 0x6dd   : > { %1701 = vrot.lane.b32.xlu1 %v1672_v0, %s2485_s25  ;;  %v2100_v19 = vpop.f32.mrb[19].mxu1 }
 0x737   : > { %v1678_v20 = vpop.permute.xlu1 %1677 }
 0x738   : > { %v1704_v24 = vsel %vm358_vm2, %v2800_v48, %v1678_v20  ;;  %v1716_v48 = vld [vmem:[#allocation2] sm:$0xff] }
 0x73b   : > { %v1682_v21 = vpop.permute.xlu0 %1681 }
 0x73c   : > { %v1705_v25 = vsel %vm433_vm3, %v1704_v24, %v1682_v21 }
 0x73f   : > { %v1686_v22 = vpop.permute.xlu1 %1685 }
 0x740   : > { %v1707_v27 = vsel %vm1706_vm4, %v1705_v25, %v1686_v22 }
 0x743   : > { %v1690_v23 = vpop.permute.xlu0 %1689 }
 0x744   : > { %v1709_v29 = vsel %vm1708_vm5, %v1707_v27, %v1690_v23 }
 0x747   : > { %v1694_v26 = vpop.permute.xlu1 %1693 }
 0x748   : > { %v1711_v30 = vsel %vm1710_vm6, %v1709_v29, %v1694_v26 }
 0x74b   : > { %v1698_v28 = vpop.permute.xlu0 %1697 }
 0x74c   : > { %v1713_v31 = vsel %vm1712_vm7, %v1711_v30, %v1698_v28 }
 0x74f   : > { %v1702_v32 = vpop.permute.xlu1 %1701 }
 0x750   : > { %v1715_v33 = vsel %vm1714_vm8, %v1713_v31, %v1702_v32 }
 0x751   : > { %2110 = vmatmul.mubr.msk.f32.vlgmr.msra.gmra.mrb[14].mxu0 %vm274_vm0, %v1715_v33 }
 0x824   : > { %v1790_v34 = vpop.f32.mrb[14].mxu0 }
 0x825   : > { %v1794_v35 = vadd.f32 %v1790_v34, %v1716_v48  ;;  %v2111_v36 = vpop.f32.mrb[15].mxu0 }
 0x827   : > { %1795 = vst.msk [vmem:[#allocation2] sm:$0xff] %vm274_vm0, %v1794_v35 }
 0x82e   : > { %v1799_v38 = vld [vmem:[#allocation2] sm:$0xff] }
 0x82f   : > { %v1807_v39 = vadd.f32 %v1963_v37, %v1799_v38 }
 0x831   : > { %1808 = vst.msk [vmem:[%s269_s29] sm:$0xff] %vm274_vm0, %v1807_v39 }
 0x832   : > { %2373 = shalt.err (!%p2370_p11)
}
 0x833   : > { %s2374_s28 = scalar_lea.hbm %s2886_s11, 128  ;;  %s2378_s25 = scalar_lea.hbm %s2940_s4, 256 }
 0x834   : > { %p2375_p0 = scmp.ne.s32.totalorder %s2886_s11, %s2374_s28  ;;  %p2379_p6 = scmp.lt.u32.totalorder %s2886_s11, %s2940_s4 }
 0x835   : > { %p2380_p7 = scmp.lt.u32.totalorder %s2378_s25, %s2374_s28  ;;  %p2382_p8 = scmp.lt.u32.totalorder %s2374_s28, %s2886_s11 }
 0x836   : > { %p2376_p4 = pnand %p2375_p0, %p2955_p12 }
 0x837   : > { %p2381_p2 = por %p2380_p7, %p2379_p6 }
 0x838   : > { %p2377_p13 = pneg %p2376_p4 }
 0x839   : > { %p2383_p1 = por %p2382_p8, %p2381_p2 }
 0x83b   : > { %p2384_p10 = pnand %p2383_p1, %p2377_p13 }
 0x83d   : > { %2387 = shalt.err (!%p2384_p10)
}
 0x83e   : > { %2134 = dma.vmem_to_hbm [thread:$0]  (%p2955_p12), %s2888_s14, 128, %s2886_s11, %s1810_s24  }
 0x83f PF: > { %s1835_s13 = sand.u32 1, %s2426_s15   ;;  %p2956_p3 = scmp.ne.s32.totalorder %s2948_s26, 0 }
 0x840   : > { %p2957_p5 = scmp.ge.s32.totalorder %s2446_s20, 2  ;;  %s1836_s29 = scalar_lea.sflag [#allocation5], %s1835_s13 }
 0x842   : > { %p2148_p9 = pnand %p2957_p5, %p2956_p3 }
 0x844   : > { %2421 = dma.done.wait (!%p2148_p9), %s1836_s29, 128  }
 0x845   : > { %2423 = vsyncadd (!%p2148_p9), %s1836_s29, 4294967168  ;;  %s21_s20 = sadd.s32 1, %s2446_s20   ;;  %s2958_s15 = smov %s2430_s16 }
 0x846   : > { %p18_p11 = scmp.ge.s32.totalorder %s21_s20, 4   ;;  %s2959_s16 = smov %s2434_s17 }
 0x847   : > { %s2960_s17 = smov %s2654_s22  ;;  %s2961_s18 = smov %s2442_s19 }
 0x848   : > { %s2962_s19 = smov %s2964_s5  ;;  %20 = sbr.rel (!%p18_p11) target bundleno = 7 (0x7), region = 99 }
 0x84f   :  { %1841 = vsyncpa [#allocation4], 1 }
 0x850   :  { %1843 = vsyncpa [#allocation4 + $0x1], 1 }
 0x851   :  { %1844 = vsyncpa [#allocation7], 1 }
 0x852   :  { %1845 = vsyncpa [#allocation5], 1 }
 0x853   :  { %1847 = vsyncpa [#allocation5 + $0x1], 1 }

</bundles_post_ra>
